<compile_context>
chip_gen: v7x
topology: tpu7x:2x2x1
jax: 0.10.0
libtpu: 0.0.40
codegen_flags: <defaults>
</compile_context>

<pallas_src>
import math

import jax
import jax.numpy as jnp
from jax.experimental import pallas as pl
from jax.experimental.pallas import tpu as pltpu

# ---------------- hyper-params (small, consistent with the module) ----------------
B = 2          # batch
S = 8          # sequence length
H = 32         # hidden_size
NH = 4         # n_heads  (H % NH == 0)
HD = H // NH   # head dim
F = 64         # hidden_ff
BN = B * NH    # (batch * head) leading dim for the per-head attention einsums


def _gelu_tanh(x):
    # tanh-approximate GELU (HF "gelu_new")
    c = math.sqrt(2.0 / math.pi)
    return 0.5 * x * (1.0 + jnp.tanh(c * (x + 0.044715 * x * x * x)))


# ----------------------------- the fused Pallas kernel -----------------------------
def encoder_layer_kernel(x_ref,        # (B*S, H)   f32
                         wqkv_ref,     # (H, 3H)    bf16   [Wq | Wk | Wv]
                         wo_ref,       # (H, H)     bf16
                         w1_ref,       # (H, F)     bf16
                         w2_ref,       # (F, H)     bf16
                         bias_ref,     # (4, 3H)    f32    rows: bqkv | bo | b1 | b2
                         alpha_ref,    # (2,)       f32    SMEM (ReZero alphas)
                         o_ref):       # (B*S, H)   f32
    x = x_ref[...]                                        # (16, 32) f32
    x_bf = x.astype(jnp.bfloat16)
    biases = bias_ref[...]                                # (4, 96) f32

    # ---- fused Q|K|V projection: ONE (16,32)x(32,96) MXU push + bias ------------
    qkv = jnp.dot(x_bf, wqkv_ref[...],
                  preferred_element_type=jnp.float32) + biases[0:1, :]   # (16, 96)

    q2d = qkv[:, 0 * H:1 * H]
    k2d = qkv[:, 1 * H:2 * H]
    v2d = qkv[:, 2 * H:3 * H]

    # ---- split heads: static lane slices -> head-leading (BN, S, HD) ------------
    def split_heads(t2d):  # (B*S, H) -> (B*NH, S, HD), n = b*NH + h
        per_head = [t2d[:, h * HD:(h + 1) * HD].reshape(B, 1, S, HD)
                    for h in range(NH)]
        return jnp.concatenate(per_head, axis=1).reshape(BN, S, HD)

    q = split_heads(q2d).astype(jnp.bfloat16)
    k = split_heads(k2d).astype(jnp.bfloat16)
    v = split_heads(v2d).astype(jnp.bfloat16)

    # ---- scaled dot-product attention (softmax in f32) --------------------------
    s = jnp.einsum("nqd,nkd->nqk", q, k,
                   preferred_element_type=jnp.float32) * (1.0 / math.sqrt(HD))
    s = s - jnp.max(s, axis=-1, keepdims=True)
    p = jnp.exp(s)
    p = p * pl.reciprocal(jnp.sum(p, axis=-1, keepdims=True), approx=True)  # EUP vrcp

    pv = jnp.einsum("nqk,nkd->nqd", p.astype(jnp.bfloat16), v,
                    preferred_element_type=jnp.float32)                      # (BN,S,HD)

    # ---- merge heads onto lanes once, then ONE Wo matmul ------------------------
    pv4 = pv.reshape(B, NH, S, HD)
    merged = jnp.concatenate([pv4[:, h].reshape(B * S, HD) for h in range(NH)],
                             axis=-1)                                        # (16, 32)
    attn = jnp.dot(merged.astype(jnp.bfloat16), wo_ref[...],
                   preferred_element_type=jnp.float32) + biases[1:2, 0:H]

    # ---- ReZero residual #1 ------------------------------------------------------
    x1 = x + alpha_ref[0] * attn                                             # (16, 32)

    # ---- position-wise feed-forward (dropout = identity in eval) ----------------
    h1 = jnp.dot(x1.astype(jnp.bfloat16), w1_ref[...],
                 preferred_element_type=jnp.float32) + biases[2:3, 0:F]
    h1 = _gelu_tanh(h1)
    ff = jnp.dot(h1.astype(jnp.bfloat16), w2_ref[...],
                 preferred_element_type=jnp.float32) + biases[3:4, 0:H]

    # ---- ReZero residual #2 ------------------------------------------------------
    o_ref[...] = x1 + alpha_ref[1] * ff


# --------------------- one-time (out of per-call path) packing ---------------------
def pack_params(params):
    (wq, bq, wk, bk, wv, bv, wo, bo, w1, b1, w2, b2, alphas) = params
    wqkv = jnp.concatenate([wq, wk, wv], axis=1).astype(jnp.bfloat16)   # (H, 3H)
    biases = jnp.zeros((4, 3 * H), jnp.float32)
    biases = biases.at[0, :3 * H].set(jnp.concatenate([bq, bk, bv]))
    biases = biases.at[1, :H].set(bo)
    biases = biases.at[2, :F].set(b1)
    biases = biases.at[3, :H].set(b2)
    return (wqkv,
            wo.astype(jnp.bfloat16),
            w1.astype(jnp.bfloat16),
            w2.astype(jnp.bfloat16),
            biases,
            alphas.astype(jnp.float32))


# ------------------------------- wrapper ------------------------------------------
@jax.jit
def encoder_layer(x, packed):
    wqkv, wo_bf, w1_bf, w2_bf, biases, alphas = packed
    x2d = x.reshape(B * S, H)

    vmem = lambda: pl.BlockSpec(memory_space=pltpu.MemorySpace.VMEM)
    smem = lambda: pl.BlockSpec(memory_space=pltpu.MemorySpace.SMEM)

    out = pl.pallas_call(
        encoder_layer_kernel,
        out_shape=jax.ShapeDtypeStruct((B * S, H), jnp.float32),
        # No grid: whole problem (~20 KB of operands) in one invocation.
        in_specs=[vmem(),                       # x2d
                  vmem(), vmem(), vmem(), vmem(),  # wqkv, wo, w1, w2 (bf16)
                  vmem(),                       # packed biases
                  smem()],                      # alphas (scalars)
        out_specs=vmem(),
    )(x2d, wqkv, wo_bf, w1_bf, w2_bf, biases, alphas)

    return out.reshape(B, S, H)


# ---------------------------- pure-JAX reference -----------------------------------
def encoder_layer_ref(x, params):
    (wq, bq, wk, bk, wv, bv, wo, bo, w1, b1, w2, b2, alphas) = params
    q = x @ wq + bq
    k = x @ wk + bk
    v = x @ wv + bv
    q = q.reshape(B, S, NH, HD).transpose(0, 2, 1, 3)
    k = k.reshape(B, S, NH, HD).transpose(0, 2, 1, 3)
    v = v.reshape(B, S, NH, HD).transpose(0, 2, 1, 3)
    scores = jnp.einsum("bhqd,bhkd->bhqk", q, k) / math.sqrt(HD)
    p = jax.nn.softmax(scores, axis=-1)
    attn = jnp.einsum("bhqk,bhkd->bhqd", p, v).transpose(0, 2, 1, 3).reshape(B, S, H)
    attn = attn @ wo + bo
    x1 = x + alphas[0] * attn
    h1 = _gelu_tanh(x1 @ w1 + b1)
    ff = h1 @ w2 + b2
    return x1 + alphas[1] * ff


# -------------------------------- main ---------------------------------------------
if __name__ == "__main__":
    key = jax.random.PRNGKey(0)
    keys = jax.random.split(key, 13)

    def init(k, shape, fan_in):
        bound = 1.0 / math.sqrt(fan_in)
        return jax.random.uniform(k, shape, jnp.float32, -bound, bound)

    x = jax.random.normal(keys[0], (B, S, H), jnp.float32)

    wq = init(keys[1], (H, H), H); bq = init(keys[2], (H,), H)
    wk = init(keys[3], (H, H), H); bk = init(keys[4], (H,), H)
    wv = init(keys[5], (H, H), H); bv = init(keys[6], (H,), H)
    wo = init(keys[7], (H, H), H); bo = init(keys[8], (H,), H)
    w1 = init(keys[9], (H, F), H); b1 = init(keys[10], (F,), H)
    w2 = init(keys[11], (F, H), F); b2 = init(keys[12], (H,), F)
    # ReZero alphas (init to 0 in the paper; nonzero here so the compute matters)
    alphas = jnp.array([0.5, 0.25], jnp.float32)

    params = (wq, bq, wk, bk, wv, bv, wo, bo, w1, b1, w2, b2, alphas)

    # One-time packing (hoisted out of the per-call path).
    packed = pack_params(params)
    packed = jax.tree_util.tree_map(jax.block_until_ready, packed)

    out = encoder_layer(x, packed)
    jax.block_until_ready(out)

    ref = encoder_layer_ref(x, params)
    assert out.shape == (B, S, H)
    max_err = float(jnp.max(jnp.abs(out - ref)))
    # Tolerance accounts for bf16 MXU operands (~2^-9 per-operand rounding across
    # 5 chained matmuls) plus the approximate EUP reciprocal in the softmax; any
    # structural error (head ordering, bias slicing, ...) would be O(0.1) or more.
    assert jnp.allclose(out, ref, atol=1e-2, rtol=1e-2), (
        f"mismatch vs JAX reference (max abs err {max_err})")

    print("KERNEL_OK")
</pallas_src>

<mosaic_0001>
module attributes {stable_mosaic.version = 11 : i64} {
  func.func @encoder_layer_kernel(%arg0: memref<16x32xf32, #tpu.memory_space<vmem>>, %arg1: memref<32x96xbf16, #tpu.memory_space<vmem>>, %arg2: memref<32x32xbf16, #tpu.memory_space<vmem>>, %arg3: memref<32x64xbf16, #tpu.memory_space<vmem>>, %arg4: memref<64x32xbf16, #tpu.memory_space<vmem>>, %arg5: memref<4x96xf32, #tpu.memory_space<vmem>>, %arg6: memref<2xf32, #tpu.memory_space<smem>>, %arg7: memref<16x32xf32, #tpu.memory_space<vmem>>) attributes {dimension_semantics = [], scalar_prefetch = 0 : i64, scratch_operands = 0 : i64, tpu.core_type = #tpu.core_type<tc>} {
    %c0 = arith.constant 0 : index
    %c0_0 = arith.constant 0 : index
    %0 = vector.load %arg0[%c0, %c0_0] : memref<16x32xf32, #tpu.memory_space<vmem>>, vector<16x32xf32>
    %1 = arith.truncf %0 : vector<16x32xf32> to vector<16x32xbf16>
    %c0_1 = arith.constant 0 : index
    %c0_2 = arith.constant 0 : index
    %2 = vector.load %arg5[%c0_1, %c0_2] : memref<4x96xf32, #tpu.memory_space<vmem>>, vector<4x96xf32>
    %c0_3 = arith.constant 0 : index
    %c0_4 = arith.constant 0 : index
    %3 = vector.load %arg1[%c0_3, %c0_4] : memref<32x96xbf16, #tpu.memory_space<vmem>>, vector<32x96xbf16>
    %cst = arith.constant dense<0.000000e+00> : vector<16x96xf32>
    %4 = tpu.matmul %1, %3, %cst {dimension_numbers = #tpu.dot_dimension_numbers<[1], [0], [0], [1], [0, 0, 1, 1], [], []>} : vector<16x32xbf16>, vector<32x96xbf16>, vector<16x96xf32> -> vector<16x96xf32>
    %5 = vector.extract_strided_slice %2 {offsets = [0, 0], sizes = [1, 96], strides = [1, 1]} : vector<4x96xf32> to vector<1x96xf32>
    %6 = vector.broadcast %5 : vector<1x96xf32> to vector<16x96xf32>
    %7 = arith.addf %4, %6 : vector<16x96xf32>
    %8 = vector.extract_strided_slice %7 {offsets = [0, 0], sizes = [16, 32], strides = [1, 1]} : vector<16x96xf32> to vector<16x32xf32>
    %9 = vector.extract_strided_slice %7 {offsets = [0, 32], sizes = [16, 32], strides = [1, 1]} : vector<16x96xf32> to vector<16x32xf32>
    %10 = vector.extract_strided_slice %7 {offsets = [0, 64], sizes = [16, 32], strides = [1, 1]} : vector<16x96xf32> to vector<16x32xf32>
    %11 = vector.extract_strided_slice %8 {offsets = [0, 0], sizes = [16, 8], strides = [1, 1]} : vector<16x32xf32> to vector<16x8xf32>
    %12 = vector.shape_cast %11 : vector<16x8xf32> to vector<2x1x8x8xf32>
    %13 = vector.extract_strided_slice %8 {offsets = [0, 8], sizes = [16, 8], strides = [1, 1]} : vector<16x32xf32> to vector<16x8xf32>
    %14 = vector.shape_cast %13 : vector<16x8xf32> to vector<2x1x8x8xf32>
    %15 = vector.extract_strided_slice %8 {offsets = [0, 16], sizes = [16, 8], strides = [1, 1]} : vector<16x32xf32> to vector<16x8xf32>
    %16 = vector.shape_cast %15 : vector<16x8xf32> to vector<2x1x8x8xf32>
    %17 = vector.extract_strided_slice %8 {offsets = [0, 24], sizes = [16, 8], strides = [1, 1]} : vector<16x32xf32> to vector<16x8xf32>
    %18 = vector.shape_cast %17 : vector<16x8xf32> to vector<2x1x8x8xf32>
    %19 = tpu.concatenate %12, %14, %16, %18 in 1 : vector<2x1x8x8xf32>, vector<2x1x8x8xf32>, vector<2x1x8x8xf32>, vector<2x1x8x8xf32> -> vector<2x4x8x8xf32>
    %20 = vector.shape_cast %19 : vector<2x4x8x8xf32> to vector<8x8x8xf32>
    %21 = arith.truncf %20 : vector<8x8x8xf32> to vector<8x8x8xbf16>
    %22 = vector.extract_strided_slice %9 {offsets = [0, 0], sizes = [16, 8], strides = [1, 1]} : vector<16x32xf32> to vector<16x8xf32>
    %23 = vector.shape_cast %22 : vector<16x8xf32> to vector<2x1x8x8xf32>
    %24 = vector.extract_strided_slice %9 {offsets = [0, 8], sizes = [16, 8], strides = [1, 1]} : vector<16x32xf32> to vector<16x8xf32>
    %25 = vector.shape_cast %24 : vector<16x8xf32> to vector<2x1x8x8xf32>
    %26 = vector.extract_strided_slice %9 {offsets = [0, 16], sizes = [16, 8], strides = [1, 1]} : vector<16x32xf32> to vector<16x8xf32>
    %27 = vector.shape_cast %26 : vector<16x8xf32> to vector<2x1x8x8xf32>
    %28 = vector.extract_strided_slice %9 {offsets = [0, 24], sizes = [16, 8], strides = [1, 1]} : vector<16x32xf32> to vector<16x8xf32>
    %29 = vector.shape_cast %28 : vector<16x8xf32> to vector<2x1x8x8xf32>
    %30 = tpu.concatenate %23, %25, %27, %29 in 1 : vector<2x1x8x8xf32>, vector<2x1x8x8xf32>, vector<2x1x8x8xf32>, vector<2x1x8x8xf32> -> vector<2x4x8x8xf32>
    %31 = vector.shape_cast %30 : vector<2x4x8x8xf32> to vector<8x8x8xf32>
    %32 = arith.truncf %31 : vector<8x8x8xf32> to vector<8x8x8xbf16>
    %33 = vector.extract_strided_slice %10 {offsets = [0, 0], sizes = [16, 8], strides = [1, 1]} : vector<16x32xf32> to vector<16x8xf32>
    %34 = vector.shape_cast %33 : vector<16x8xf32> to vector<2x1x8x8xf32>
    %35 = vector.extract_strided_slice %10 {offsets = [0, 8], sizes = [16, 8], strides = [1, 1]} : vector<16x32xf32> to vector<16x8xf32>
    %36 = vector.shape_cast %35 : vector<16x8xf32> to vector<2x1x8x8xf32>
    %37 = vector.extract_strided_slice %10 {offsets = [0, 16], sizes = [16, 8], strides = [1, 1]} : vector<16x32xf32> to vector<16x8xf32>
    %38 = vector.shape_cast %37 : vector<16x8xf32> to vector<2x1x8x8xf32>
    %39 = vector.extract_strided_slice %10 {offsets = [0, 24], sizes = [16, 8], strides = [1, 1]} : vector<16x32xf32> to vector<16x8xf32>
    %40 = vector.shape_cast %39 : vector<16x8xf32> to vector<2x1x8x8xf32>
    %41 = tpu.concatenate %34, %36, %38, %40 in 1 : vector<2x1x8x8xf32>, vector<2x1x8x8xf32>, vector<2x1x8x8xf32>, vector<2x1x8x8xf32> -> vector<2x4x8x8xf32>
    %42 = vector.shape_cast %41 : vector<2x4x8x8xf32> to vector<8x8x8xf32>
    %43 = arith.truncf %42 : vector<8x8x8xf32> to vector<8x8x8xbf16>
    "tpu.trace_start"() <{level = 10 : i32, message = "nqd,nkd->nqk"}> : () -> ()
    %cst_5 = arith.constant dense<0.000000e+00> : vector<8x8x8xf32>
    %44 = tpu.matmul %21, %32, %cst_5 {dimension_numbers = #tpu.dot_dimension_numbers<[2], [2], [1], [1], [0, 0, 0, 1, 1, 1], [0], [0]>} : vector<8x8x8xbf16>, vector<8x8x8xbf16>, vector<8x8x8xf32> -> vector<8x8x8xf32>
    "tpu.trace_stop"() : () -> ()
    %cst_6 = arith.constant 0.353553385 : f32
    %45 = vector.broadcast %cst_6 : f32 to vector<8x8x8xf32>
    %46 = arith.mulf %44, %45 : vector<8x8x8xf32>
    %cst_7 = arith.constant dense<0xFF800000> : vector<8x8xf32>
    %47 = vector.multi_reduction <maximumf>, %46, %cst_7 [2] : vector<8x8x8xf32> to vector<8x8xf32>
    %48 = vector.shape_cast %47 : vector<8x8xf32> to vector<8x8x1xf32>
    %49 = vector.broadcast %48 : vector<8x8x1xf32> to vector<8x8x8xf32>
    %50 = arith.subf %46, %49 : vector<8x8x8xf32>
    %51 = math.exp %50 : vector<8x8x8xf32>
    %cst_8 = arith.constant dense<0.000000e+00> : vector<8x8xf32>
    %52 = vector.multi_reduction <add>, %51, %cst_8 [2] : vector<8x8x8xf32> to vector<8x8xf32>
    %53 = vector.shape_cast %52 : vector<8x8xf32> to vector<8x8x1xf32>
    %54 = tpu.reciprocal %53 {approx = true} : vector<8x8x1xf32> -> vector<8x8x1xf32>
    %55 = vector.broadcast %54 : vector<8x8x1xf32> to vector<8x8x8xf32>
    %56 = arith.mulf %51, %55 : vector<8x8x8xf32>
    %57 = arith.truncf %56 : vector<8x8x8xf32> to vector<8x8x8xbf16>
    "tpu.trace_start"() <{level = 10 : i32, message = "nqk,nkd->nqd"}> : () -> ()
    %cst_9 = arith.constant dense<0.000000e+00> : vector<8x8x8xf32>
    %58 = tpu.matmul %57, %43, %cst_9 {dimension_numbers = #tpu.dot_dimension_numbers<[2], [1], [1], [2], [0, 0, 0, 1, 1, 2], [0], [0]>} : vector<8x8x8xbf16>, vector<8x8x8xbf16>, vector<8x8x8xf32> -> vector<8x8x8xf32>
    "tpu.trace_stop"() : () -> ()
    %59 = vector.shape_cast %58 : vector<8x8x8xf32> to vector<2x4x8x8xf32>
    %60 = vector.extract_strided_slice %59 {offsets = [0, 0, 0, 0], sizes = [2, 1, 8, 8], strides = [1, 1, 1, 1]} : vector<2x4x8x8xf32> to vector<2x1x8x8xf32>
    %61 = vector.shape_cast %60 : vector<2x1x8x8xf32> to vector<2x8x8xf32>
    %62 = vector.shape_cast %61 : vector<2x8x8xf32> to vector<16x8xf32>
    %63 = vector.extract_strided_slice %59 {offsets = [0, 1, 0, 0], sizes = [2, 1, 8, 8], strides = [1, 1, 1, 1]} : vector<2x4x8x8xf32> to vector<2x1x8x8xf32>
    %64 = vector.shape_cast %63 : vector<2x1x8x8xf32> to vector<2x8x8xf32>
    %65 = vector.shape_cast %64 : vector<2x8x8xf32> to vector<16x8xf32>
    %66 = vector.extract_strided_slice %59 {offsets = [0, 2, 0, 0], sizes = [2, 1, 8, 8], strides = [1, 1, 1, 1]} : vector<2x4x8x8xf32> to vector<2x1x8x8xf32>
    %67 = vector.shape_cast %66 : vector<2x1x8x8xf32> to vector<2x8x8xf32>
    %68 = vector.shape_cast %67 : vector<2x8x8xf32> to vector<16x8xf32>
    %69 = vector.extract_strided_slice %59 {offsets = [0, 3, 0, 0], sizes = [2, 1, 8, 8], strides = [1, 1, 1, 1]} : vector<2x4x8x8xf32> to vector<2x1x8x8xf32>
    %70 = vector.shape_cast %69 : vector<2x1x8x8xf32> to vector<2x8x8xf32>
    %71 = vector.shape_cast %70 : vector<2x8x8xf32> to vector<16x8xf32>
    %72 = tpu.concatenate %62, %65, %68, %71 in 1 : vector<16x8xf32>, vector<16x8xf32>, vector<16x8xf32>, vector<16x8xf32> -> vector<16x32xf32>
    %73 = arith.truncf %72 : vector<16x32xf32> to vector<16x32xbf16>
    %c0_10 = arith.constant 0 : index
    %c0_11 = arith.constant 0 : index
    %74 = vector.load %arg2[%c0_10, %c0_11] : memref<32x32xbf16, #tpu.memory_space<vmem>>, vector<32x32xbf16>
    %cst_12 = arith.constant dense<0.000000e+00> : vector<16x32xf32>
    %75 = tpu.matmul %73, %74, %cst_12 {dimension_numbers = #tpu.dot_dimension_numbers<[1], [0], [0], [1], [0, 0, 1, 1], [], []>} : vector<16x32xbf16>, vector<32x32xbf16>, vector<16x32xf32> -> vector<16x32xf32>
    %76 = vector.extract_strided_slice %2 {offsets = [1, 0], sizes = [1, 32], strides = [1, 1]} : vector<4x96xf32> to vector<1x32xf32>
    %77 = vector.broadcast %76 : vector<1x32xf32> to vector<16x32xf32>
    %78 = arith.addf %75, %77 : vector<16x32xf32>
    %c0_13 = arith.constant 0 : index
    %79 = memref.load %arg6[%c0_13] : memref<2xf32, #tpu.memory_space<smem>>
    %80 = vector.broadcast %79 : f32 to vector<16x32xf32>
    %81 = arith.mulf %80, %78 : vector<16x32xf32>
    %82 = arith.addf %0, %81 : vector<16x32xf32>
    %83 = arith.truncf %82 : vector<16x32xf32> to vector<16x32xbf16>
    %c0_14 = arith.constant 0 : index
    %c0_15 = arith.constant 0 : index
    %84 = vector.load %arg3[%c0_14, %c0_15] : memref<32x64xbf16, #tpu.memory_space<vmem>>, vector<32x64xbf16>
    %cst_16 = arith.constant dense<0.000000e+00> : vector<16x64xf32>
    %85 = tpu.matmul %83, %84, %cst_16 {dimension_numbers = #tpu.dot_dimension_numbers<[1], [0], [0], [1], [0, 0, 1, 1], [], []>} : vector<16x32xbf16>, vector<32x64xbf16>, vector<16x64xf32> -> vector<16x64xf32>
    %86 = vector.extract_strided_slice %2 {offsets = [2, 0], sizes = [1, 64], strides = [1, 1]} : vector<4x96xf32> to vector<1x64xf32>
    %87 = vector.broadcast %86 : vector<1x64xf32> to vector<16x64xf32>
    %88 = arith.addf %85, %87 : vector<16x64xf32>
    %cst_17 = arith.constant 5.000000e-01 : f32
    %89 = vector.broadcast %cst_17 : f32 to vector<16x64xf32>
    %90 = arith.mulf %89, %88 : vector<16x64xf32>
    %cst_18 = arith.constant 4.471500e-02 : f32
    %91 = vector.broadcast %cst_18 : f32 to vector<16x64xf32>
    %92 = arith.mulf %91, %88 : vector<16x64xf32>
    %93 = arith.mulf %92, %88 : vector<16x64xf32>
    %94 = arith.mulf %93, %88 : vector<16x64xf32>
    %95 = arith.addf %88, %94 : vector<16x64xf32>
    %cst_19 = arith.constant 0.797884583 : f32
    %96 = vector.broadcast %cst_19 : f32 to vector<16x64xf32>
    %97 = arith.mulf %96, %95 : vector<16x64xf32>
    %98 = math.tanh %97 : vector<16x64xf32>
    %cst_20 = arith.constant 1.000000e+00 : f32
    %99 = vector.broadcast %cst_20 : f32 to vector<16x64xf32>
    %100 = arith.addf %99, %98 : vector<16x64xf32>
    %101 = arith.mulf %90, %100 : vector<16x64xf32>
    %102 = arith.truncf %101 : vector<16x64xf32> to vector<16x64xbf16>
    %c0_21 = arith.constant 0 : index
    %c0_22 = arith.constant 0 : index
    %103 = vector.load %arg4[%c0_21, %c0_22] : memref<64x32xbf16, #tpu.memory_space<vmem>>, vector<64x32xbf16>
    %cst_23 = arith.constant dense<0.000000e+00> : vector<16x32xf32>
    %104 = tpu.matmul %102, %103, %cst_23 {dimension_numbers = #tpu.dot_dimension_numbers<[1], [0], [0], [1], [0, 0, 1, 1], [], []>} : vector<16x64xbf16>, vector<64x32xbf16>, vector<16x32xf32> -> vector<16x32xf32>
    %105 = vector.extract_strided_slice %2 {offsets = [3, 0], sizes = [1, 32], strides = [1, 1]} : vector<4x96xf32> to vector<1x32xf32>
    %106 = vector.broadcast %105 : vector<1x32xf32> to vector<16x32xf32>
    %107 = arith.addf %104, %106 : vector<16x32xf32>
    %c1 = arith.constant 1 : index
    %108 = memref.load %arg6[%c1] : memref<2xf32, #tpu.memory_space<smem>>
    %109 = vector.broadcast %108 : f32 to vector<16x32xf32>
    %110 = arith.mulf %109, %107 : vector<16x32xf32>
    %111 = arith.addf %82, %110 : vector<16x32xf32>
    %c0_24 = arith.constant 0 : index
    %c0_25 = arith.constant 0 : index
    %112 = vector.load %arg7[%c0_24, %c0_25] : memref<16x32xf32, #tpu.memory_space<vmem>>, vector<16x32xf32>
    tpu.vector_store %arg7[%c0_24, %c0_25], %111 {strides = array<i32>} : memref<16x32xf32, #tpu.memory_space<vmem>>, vector<16x32xf32>,
    return
  }
}

</mosaic_0001>

<bundles_post_ra>
// kernel: encoder_layer.1
= control target key start
LH: loop header
LB: loop body
LE: loop exit
PB: predicated region body
PF: predicated region fallthrough
CT: control target
= control target key end

     0   :  { %12 = vsyncpa [#allocation3], 0  ;;  %s2018_s0 = inlined_call_operand.vmem [shape: f32[16,32], index: 0, kind: input, shape index: {}]   ;;  %s2019_s1 = inlined_call_operand.vmem [shape: bf16[32,96], index: 1, kind: input, shape index: {}]   ;;  %s2020_s2 = inlined_call_operand.vmem [shape: bf16[32,32], index: 2, kind: input, shape index: {}]   ;;  %s2021_s3 = inlined_call_operand.hbm [shape: bf16[32,64], index: 3, kind: input, shape index: {}]   ;;  %s2022_s4 = inlined_call_operand.vmem [shape: bf16[64,32], index: 4, kind: input, shape index: {}]   ;;  %s2023_s5 = inlined_call_operand.vmem [shape: f32[4,96], index: 5, kind: input, shape index: {}]   ;;  %s2024_s6 = inlined_call_operand.vmem [shape: f32[2], index: 6, kind: input, shape index: {}]   ;;  %s2025_s7 = inlined_call_operand.hbm [shape: f32[16,32], index: 7, kind: output, shape index: {}]  }
   0x1   :  { %13 = vsyncpa [#allocation5], 0 }
   0x2   :  { %14 = vsyncpa [#allocation4], 0  ;;  %s1675_s24 = smov [#allocation2]   ;;  %s43_s28 = sshll.u32 %s2024_s6, 4  ;;  %s44_s28 = int_to_ptr.vmem [resolvable:$true] %s43_s28 }
   0x3   :  { %s26_s25 = sshll.u32 %s1675_s24, 4  ;;  %s1613_s8 = scalar_lea.hbm %s2021_s3, 256  ;;  %s27_s25 = int_to_ptr.vmem [resolvable:$true] %s26_s25 }
   0x4   :  { %p1614_p0 = scmp.ne.s32.totalorder %s2021_s3, %s1613_s8  ;;  %p1617_p1 = scmp.lt.u32.totalorder %s1613_s8, %s2021_s3 }
   0x6   :  { %p1619_p2 = pnand %p1617_p1, %p1614_p0 }
   0x8   :  { %1622 = shalt.err (!%p1619_p2)
}
   0x9   :  { %s1623_s13 = scalar_lea.vmem %s27_s25, 256  ;;  %p1628_p4 = scmp.lt.s32.totalorder %s27_s25, %s27_s25 }
   0xa   :  { %p1624_p3 = scmp.ne.s32.totalorder %s27_s25, %s1623_s13  ;;  %p1629_p5 = scmp.lt.s32.totalorder %s1623_s13, %s1623_s13 }
   0xc   :  { %p1630_p6 = por %p1629_p5, %p1628_p4 }
   0xe   :  { %p1631_p7 = pnand %p1630_p6, %p1624_p3 }
  0x10   :  { %1634 = shalt.err (!%p1631_p7)
}
  0x11   :  { %s1676_s6 = smov 64   ;;  %s1677_s14 = smov 4  }
  0x12   :  { %32 = dma.hbm_to_vmem [thread:$0]  %s2021_s3, 256, %s27_s25, [#allocation3], %s1676_s6, %s1676_s6, %s1677_s14  }
  0x13   :  { %s1635_s17 = scalar_lea.vmem %s44_s28, 16  ;;  %p1640_p9 = scmp.lt.s32.totalorder %s44_s28, %s44_s28 }
  0x14   :  { %p1636_p8 = scmp.ne.s32.totalorder %s44_s28, %s1635_s17  ;;  %p1641_p10 = scmp.lt.s32.totalorder %s1635_s17, %s1635_s17 }
  0x16   :  { %p1642_p11 = por %p1641_p10, %p1640_p9 }
  0x18   :  { %p1643_p12 = pnand %p1642_p11, %p1636_p8 }
  0x1a   :  { %1646 = shalt.err (!%p1643_p12)
}
  0x1b   :  { %s1678_s18 = smov [#allocation6]  }
  0x1c   :  { %46 = dma.vmem_to_smem %s44_s28, 16, %s1678_s18, [#allocation5]  }
  0x1d   :  { %1669 = dma.done.wait [#allocation3], 256  }
  0x1e   :  { %1670 = vsyncadd [#allocation3], 4294967040 }
  0x1f   :  { %1671 = dma.done.wait [#allocation5], 16  }
  0x20   :  { %1672 = vsyncadd [#allocation5], 4294967280 }
  0x21   :  { %53 = sfence }
  0x22   :  { %v1567_v0 = vld [vmem:[%s2019_s1] sm:$0xff]   ;;  %v1679_v1 = vmov 0.0   ;;  %v1568_v2 = vld [vmem:[%s2019_s1 + $0x8] sm:$0xff]   ;;  %vm1680_vm0 = vmmov 0   ;;  %vm79_vm1 = vcmask 261120   ;;  %v63_v6 = vlaneseq  ;;  %s1681_s26 = smov 104  }
  0x23   :  { %1405 = vmatprep.subr.bf16.mxu0 %v1679_v1  ;;  %1413 = vmatprep.subr.bf16.mxu1 %v1679_v1  ;;  %v1760_v3 = vld [vmem:[%s2018_s0] sm:$0xff]  ;;  %v1765_v4 = vld [vmem:[%s2018_s0 + $0x8] sm:$0xff]  ;;  %s1682_s27 = smov 120   ;;  %s1683_s28 = smov 112   ;;  %vm155_vm2 = vcmask 64512   ;;  %vm654_vm3 = vcmask 1043456  }
  0x24   :  { %1406 = vmatpush3.bf16.msra.mxu0 %v1567_v0  ;;  %1409 = vmatprep.mubr.msk.bf16.mxu0 %vm1680_vm0, %v1679_v1  ;;  %v57_v5 = vpack.c.bf16 %v1765_v4, %v1760_v3  ;;  %v1776_v7 = vshrl.u32 %v63_v6, 7  ;;  %v1782_v9 = vld [vmem:[%s2023_s5] sm:$0xf]  ;;  %s1684_s5 = smov 96   ;;  %s1685_s10 = smov 8   ;;  %vm1060_vm4 = vcmask 130048  }
  0x25   :  { %1407 = vmatprep.subr.bf16.mxu0 %v1679_v1  ;;  %1415 = vmatprep.mubr.msk.bf16.mxu1 %vm1680_vm0, %v1679_v1  ;;  %s1686_s11 = smov 16   ;;  %vm1063_vm5 = vcmask 195584   ;;  %s1131_s12 = sld [smem:[#allocation6]]  ;;  %vm1257_vm6 = vcmask 523264  }
  0x26   :  { %v65_v8 = vsub.s32 0, %v1776_v7  ;;  %s1688_s20 = smov [#allocation7]  }
  0x27   :  { %s1315_s3 = sshll.u32 %s1688_s20, 4  ;;  %s1316_s3 = int_to_ptr.vmem [resolvable:$true] %s1315_s3 }
  0x28   :  { %1408 = vmatpush3.bf16.msra.mxu0 %v1568_v2  ;;  %v66_v10 = vrot.slane %v1782_v9, %v65_v8  ;;  %s1647_s21 = scalar_lea.vmem %s1316_s3, 256  ;;  %p1652_p0 = scmp.lt.s32.totalorder %s1316_s3, %s1316_s3 }
  0x29   :  { %1419 = vmatprep.subr.bf16.mxu0 %v1679_v1  ;;  %p1648_p13 = scmp.ne.s32.totalorder %s1316_s3, %s1647_s21  ;;  %p1653_p1 = scmp.lt.s32.totalorder %s1647_s21, %s1647_s21 }
  0x2b   :  { %1410 = vmatmul.mubr.msk.bf16.vlgmr.msra.gmra.mrb[0].mxu0 %vm79_vm1, %v57_v5  ;;  %p1654_p2 = por %p1653_p1, %p1652_p0 }
  0x2c   :  { %1421 = vmatprep.mubr.msk.bf16.mxu0 %vm1680_vm0, %v1679_v1 }
  0x2d   :  { %p1655_p3 = pnand %p1654_p2, %p1648_p13 }
  0xfe   :  { %v117_v11 = vpop.f32.mrb[0].mxu0 }
  0xff   :  { %v118_v12 = vadd.f32 %v117_v11, %v66_v10  ;;  %v1411_v13 = vpop.f32.mrb[1].mxu0 }
 0x100   :  { %v120_v14 = vpop.f32.mrb[2].mxu0 }
 0x101   :  { %138 = vrot.lane.b32.xlu1 %v118_v12, %s1681_s26  ;;  %126 = vrot.lane.b32.xlu0 %v118_v12, %s1682_s27  ;;  %v1412_v15 = vpop.f32.mrb[3].mxu0  ;;  %v121_v16 = vadd.f32 %v120_v14, %v66_v10  ;;  %v144_v17 = vpack.c.bf16 %v118_v12, %v118_v12 }
 0x103   :  { %v1796_v27 = vpack.c.bf16 %v121_v16, %v121_v16 }
 0x105   :  { %132 = vrot.lane.b32.xlu0 %v118_v12, %s1683_s28  ;;  %128 = vrot.lane.b32.xlu1 %v121_v16, %s1682_s27 }
 0x109   :  { %134 = vrot.lane.b32.xlu0 %v121_v16, %s1683_s28  ;;  %140 = vrot.lane.b32.xlu1 %v121_v16, %s1681_s26 }
 0x10d   :  { %153 = vrot.lane.b32.xlu0 %v144_v17, %s1684_s5 }
 0x173   :  { %v139_v18 = vpop.permute.xlu1 %138  ;;  %v127_v19 = vpop.permute.xlu0 %126 }
 0x174   :  { %v1785_v20 = vpack.c.bf16 %v127_v19, %v127_v19  ;;  %v1788_v23 = vpack.c.bf16 %v139_v18, %v139_v18 }
 0x176   :  { %203 = vrot.lane.b32.xlu1 %v1785_v20, %s1684_s5 }
 0x177   :  { %v133_v21 = vpop.permute.xlu0 %132  ;;  %v129_v22 = vpop.permute.xlu1 %128 }
 0x178   :  { %v1790_v24 = vpack.c.bf16 %v133_v21, %v133_v21  ;;  %v1794_v26 = vpack.c.bf16 %v129_v22, %v129_v22 }
 0x17a   :  { %252 = vrot.lane.b32.xlu0 %v1790_v24, %s1684_s5  ;;  %301 = vrot.lane.b32.xlu1 %v1788_v23, %s1684_s5 }
 0x17b   :  { %v135_v25 = vpop.permute.xlu0 %134  ;;  %v141_v28 = vpop.permute.xlu1 %140 }
 0x17c   :  { %v1800_v30 = vpack.c.bf16 %v135_v25, %v135_v25  ;;  %v1802_v31 = vpack.c.bf16 %v141_v28, %v141_v28 }
 0x17e   :  { %399 = vrot.lane.b32.xlu1 %v1794_v26, %s1684_s5  ;;  %350 = vrot.lane.b32.xlu0 %v1796_v27, %s1684_s5 }
 0x17f   :  { %v154_v29 = vpop.permute.xlu0 %153 }
 0x180   :  { %v160_v32 = vsel %vm155_vm2, %v154_v29, 0 }
 0x181   :  { %1414 = vmatpush3.bf16.xpose.msra.mxu1 %v160_v32 }
 0x182   :  { %497 = vrot.lane.b32.xlu1 %v1802_v31, %s1684_s5  ;;  %448 = vrot.lane.b32.xlu0 %v1800_v30, %s1684_s5 }
 0x183   :  { %1425 = vmatprep.subr.bf16.mxu1 %v1679_v1 }
 0x186   :  { %649 = vrot.lane.b32.xlu1 %v144_v17, %s1676_s6 }
 0x188   :  { %1416 = vmatmul.mubr.msk.bf16.vlgmr.msra.gmra.mrb[0].mxu1 %vm155_vm2, %v144_v17 }
 0x189   :  { %1427 = vmatprep.mubr.msk.bf16.mxu1 %vm1680_vm0, %v1679_v1 }
 0x1e8   :  { %v204_v33 = vpop.permute.xlu1 %203 }
 0x1e9   :  { %v209_v34 = vsel %vm155_vm2, %v204_v33, 0 }
 0x1ea   :  { %1420 = vmatpush3.bf16.xpose.msra.mxu0 %v209_v34 }
 0x1eb   :  { %1431 = vmatprep.subr.bf16.mxu0 %v1679_v1 }
 0x1ec   :  { %v253_v35 = vpop.permute.xlu0 %252  ;;  %v302_v37 = vpop.permute.xlu1 %301 }
 0x1ed   :  { %v258_v36 = vsel %vm155_vm2, %v253_v35, 0  ;;  %v307_v38 = vsel %vm155_vm2, %v302_v37, 0 }
 0x1ee   :  { %1426 = vmatpush3.bf16.xpose.msra.mxu1 %v258_v36 }
 0x1ef   :  { %1437 = vmatprep.subr.bf16.mxu1 %v1679_v1 }
 0x1f0   :  { %v351_v39 = vpop.permute.xlu0 %350  ;;  %v400_v41 = vpop.permute.xlu1 %399 }
 0x1f1   :  { %1422 = vmatmul.mubr.msk.bf16.vlgmr.msra.gmra.mrb[4].mxu0 %vm155_vm2, %v1785_v20  ;;  %v356_v40 = vsel %vm155_vm2, %v351_v39, 0  ;;  %v405_v42 = vsel %vm155_vm2, %v400_v41, 0 }
 0x1f2   :  { %1432 = vmatpush3.bf16.xpose.msra.mxu0 %v307_v38  ;;  %1433 = vmatprep.mubr.msk.bf16.mxu0 %vm1680_vm0, %v1679_v1 }
 0x1f3   :  { %1443 = vmatprep.subr.bf16.mxu0 %v1679_v1 }
 0x1f4   :  { %v449_v43 = vpop.permute.xlu0 %448  ;;  %v498_v44 = vpop.permute.xlu1 %497 }
 0x1f5   :  { %1428 = vmatmul.mubr.msk.bf16.vlgmr.msra.gmra.mrb[4].mxu1 %vm155_vm2, %v1790_v24  ;;  %v454_v45 = vsel %vm155_vm2, %v449_v43, 0  ;;  %v503_v46 = vsel %vm155_vm2, %v498_v44, 0 }
 0x1f6   :  { %1438 = vmatpush3.bf16.xpose.msra.mxu1 %v356_v40  ;;  %1439 = vmatprep.mubr.msk.bf16.mxu1 %vm1680_vm0, %v1679_v1 }
 0x1f7   :  { %1449 = vmatprep.subr.bf16.mxu1 %v1679_v1 }
 0x1f8   :  { %v650_v47 = vpop.permute.xlu1 %649 }
 0x1f9   :  { %1434 = vmatmul.mubr.msk.bf16.vlgmr.msra.gmra.mrb[8].mxu0 %vm155_vm2, %v1788_v23  ;;  %v656_v48 = vsel %vm654_vm3, %v650_v47, 0 }
 0x1fa   :  { %1444 = vmatpush3.bf16.xpose.msra.mxu0 %v405_v42  ;;  %1445 = vmatprep.mubr.msk.bf16.mxu0 %vm1680_vm0, %v1679_v1 }
 0x1fb   :  { %1455 = vmatprep.subr.bf16.mxu0 %v1679_v1 }
 0x1fd   :  { %1440 = vmatmul.mubr.msk.bf16.vlgmr.msra.gmra.mrb[8].mxu1 %vm155_vm2, %v1796_v27 }
 0x1fe   :  { %1450 = vmatpush3.bf16.xpose.msra.mxu1 %v454_v45  ;;  %1451 = vmatprep.mubr.msk.bf16.mxu1 %vm1680_vm0, %v1679_v1 }
 0x1ff   :  { %1461 = vmatprep.subr.bf16.mxu1 %v1679_v1 }
 0x201   :  { %1446 = vmatmul.mubr.msk.bf16.vlgmr.msra.gmra.mrb[12].mxu0 %vm155_vm2, %v1794_v26 }
 0x202   :  { %1456 = vmatpush3.bf16.xpose.msra.mxu0 %v503_v46  ;;  %1457 = vmatprep.mubr.msk.bf16.mxu0 %vm1680_vm0, %v1679_v1 }
 0x203   :  { %1467 = vmatprep.subr.bf16.mxu0 %v1679_v1 }
 0x205   :  { %1452 = vmatmul.mubr.msk.bf16.vlgmr.msra.gmra.mrb[12].mxu1 %vm155_vm2, %v1800_v30 }
 0x206   :  { %1462 = vmatpush3.bf16.msra.mxu1 %v656_v48  ;;  %1463 = vmatprep.mubr.msk.bf16.mxu1 %vm1680_vm0, %v1679_v1 }
 0x207   :  { %1473 = vmatprep.subr.bf16.mxu1 %v1679_v1 }
 0x209   :  { %1458 = vmatmul.mubr.msk.bf16.vlgmr.msra.gmra.mrb[16].mxu0 %vm155_vm2, %v1802_v31 }
 0x20a   :  { %1469 = vmatprep.mubr.msk.bf16.mxu0 %vm1680_vm0, %v1679_v1 }
 0x25b   :  { %v196_v49 = vpop.f32.mrb[0].mxu1 }
 0x25c   :  { %v545_v50 = vmul.f32 0.35355338, %v196_v49  ;;  %v1417_v51 = vpop.f32.mrb[1].mxu1 }
 0x25d   :  { %v199_v52 = vpop.f32.mrb[2].mxu1 }
 0x25e   :  { %v1418_v53 = vpop.f32.mrb[3].mxu1  ;;  %v553_v54 = vsel %vm155_vm2, %v545_v50, -inf }
 0x25f   :  { %554 = vmax.xlane.f32.xlu0 %v553_v54 }
 0x2c4   :  { %v245_v55 = vpop.f32.mrb[4].mxu0 }
 0x2c5   :  { %v546_v56 = vmul.f32 0.35355338, %v245_v55  ;;  %v1423_v57 = vpop.f32.mrb[5].mxu0 }
 0x2c6   :  { %v248_v58 = vpop.f32.mrb[6].mxu0 }
 0x2c7   :  { %v1424_v59 = vpop.f32.mrb[7].mxu0  ;;  %v556_v60 = vsel %vm155_vm2, %v546_v56, -inf }
 0x2c8   :  { %v294_v61 = vpop.f32.mrb[4].mxu1  ;;  %557 = vmax.xlane.f32.xlu1 %v556_v60 }
 0x2c9   :  { %v547_v62 = vmul.f32 0.35355338, %v294_v61  ;;  %v1429_v63 = vpop.f32.mrb[5].mxu1 }
 0x2ca   :  { %v297_v0 = vpop.f32.mrb[6].mxu1 }
 0x2cb   :  { %v1430_v2 = vpop.f32.mrb[7].mxu1  ;;  %v559_v5 = vsel %vm155_vm2, %v547_v62, -inf }
 0x2cc   :  { %560 = vmax.xlane.f32.xlu0 %v559_v5  ;;  %v343_v6 = vpop.f32.mrb[8].mxu0 }
 0x2cd   :  { %v548_v8 = vmul.f32 0.35355338, %v343_v6  ;;  %v1435_v10 = vpop.f32.mrb[9].mxu0 }
 0x2ce   :  { %v346_v11 = vpop.f32.mrb[10].mxu0 }
 0x2cf   :  { %v1436_v12 = vpop.f32.mrb[11].mxu0  ;;  %v562_v13 = vsel %vm155_vm2, %v548_v8, -inf }
 0x2d0   :  { %v392_v14 = vpop.f32.mrb[8].mxu1  ;;  %563 = vmax.xlane.f32.xlu0 %v562_v13 }
 0x2d1   :  { %v1860_v15 = vmul.f32 0.35355338, %v392_v14  ;;  %v1441_v16 = vpop.f32.mrb[9].mxu1 }
 0x2d2   :  { %v395_v17 = vpop.f32.mrb[10].mxu1 }
 0x2d3   :  { %v1442_v18 = vpop.f32.mrb[11].mxu1  ;;  %v565_v19 = vsel %vm155_vm2, %v1860_v15, -inf }
 0x2d4   :  { %566 = vmax.xlane.f32.xlu1 %v565_v19  ;;  %v441_v21 = vpop.f32.mrb[12].mxu0 }
 0x2d5   :  { %v1864_v22 = vmul.f32 0.35355338, %v441_v21  ;;  %v1447_v25 = vpop.f32.mrb[13].mxu0 }
 0x2d6   :  { %v444_v28 = vpop.f32.mrb[14].mxu0 }
 0x2d7   :  { %v1448_v29 = vpop.f32.mrb[15].mxu0  ;;  %v568_v32 = vsel %vm155_vm2, %v1864_v22, -inf }
 0x2d8   :  { %v490_v33 = vpop.f32.mrb[12].mxu1  ;;  %569 = vmax.xlane.f32.xlu0 %v568_v32 }
 0x2d9   :  { %v551_v34 = vmul.f32 0.35355338, %v490_v33  ;;  %v1453_v35 = vpop.f32.mrb[13].mxu1 }
 0x2da   :  { %v493_v36 = vpop.f32.mrb[14].mxu1 }
 0x2db   :  { %v1454_v37 = vpop.f32.mrb[15].mxu1  ;;  %v571_v38 = vsel %vm155_vm2, %v551_v34, -inf }
 0x2dc   :  { %572 = vmax.xlane.f32.xlu1 %v571_v38  ;;  %v539_v39 = vpop.f32.mrb[16].mxu0 }
 0x2dd   :  { %v552_v40 = vmul.f32 0.35355338, %v539_v39  ;;  %v1459_v41 = vpop.f32.mrb[17].mxu0 }
 0x2de   :  { %v542_v42 = vpop.f32.mrb[18].mxu0 }
 0x2df   :  { %v1460_v43 = vpop.f32.mrb[19].mxu0  ;;  %v574_v44 = vsel %vm155_vm2, %v552_v40, -inf }
 0x2e0   :  { %575 = vmax.xlane.f32.xlu0 %v574_v44 }
 0x2ec   :  { %v555_v45 = vpop.xlane.xlu0 %554 }
 0x2ed   :  { %746 = vrot.lane.b32.xlu1 %v1790_v24, %s1676_s6  ;;  %v577_v46 = vsub.f32 %v545_v50, %v555_v45 }
 0x2ef   :  { %v585_v47 = vmul.f32 1.442695, %v577_v46 }
 0x2f1   :  { %794 = vrot.lane.b32.xlu1 %v1788_v23, %s1676_s6  ;;  %1577 = vpow2.f32 %v585_v47 }
 0x2f6   :  { %698 = vrot.lane.b32.xlu0 %v1785_v20, %s1676_s6 }
 0x2fb   :  { %v1876_v48 = vpop.eup %1577 }
 0x2fc   :  { %v601_v49 = vsel %vm155_vm2, %v1876_v48, 0.0 }
 0x315   :  { %602 = vadd.xlane.f32.xlu1 %v601_v49 }
 0x355   :  { %v558_v51 = vpop.xlane.xlu1 %557 }
 0x356   :  { %v578_v52 = vsub.f32 %v546_v56, %v558_v51 }
 0x358   :  { %v587_v53 = vmul.f32 1.442695, %v578_v52 }
 0x359   :  { %v561_v24 = vpop.xlane.xlu0 %560 }
 0x35a   :  { %1579 = vpow2.f32 %v587_v53  ;;  %v579_v54 = vsub.f32 %v547_v62, %v561_v24 }
 0x35c   :  { %v589_v23 = vmul.f32 1.442695, %v579_v54 }
 0x35d   :  { %v564_v55 = vpop.xlane.xlu0 %563 }
 0x35e   :  { %1581 = vpow2.f32 %v589_v23  ;;  %v580_v20 = vsub.f32 %v548_v8, %v564_v55 }
 0x360   :  { %v591_v57 = vmul.f32 1.442695, %v580_v20 }
 0x361   :  { %v567_v5 = vpop.xlane.xlu1 %566 }
 0x362   :  { %1583 = vpow2.f32 %v591_v57  ;;  %v581_v6 = vsub.f32 %v1860_v15, %v567_v5 }
 0x364   :  { %v1880_v50 = vpop.eup %1579  ;;  %v593_v11 = vmul.f32 1.442695, %v581_v6 }
 0x365   :  { %v604_v58 = vsel %vm155_vm2, %v1880_v50, 0.0  ;;  %v570_v60 = vpop.xlane.xlu0 %569 }
 0x366   :  { %605 = vadd.xlane.f32.xlu0 %v604_v58  ;;  %v582_v10 = vsub.f32 %v1864_v22, %v570_v60  ;;  %1585 = vpow2.f32 %v593_v11 }
 0x368   :  { %v1884_v59 = vpop.eup %1581  ;;  %v595_v13 = vmul.f32 1.442695, %v582_v10 }
 0x369   :  { %v607_v56 = vsel %vm155_vm2, %v1884_v59, 0.0  ;;  %v573_v8 = vpop.xlane.xlu1 %572 }
 0x36a   :  { %608 = vadd.xlane.f32.xlu1 %v607_v56  ;;  %v583_v12 = vsub.f32 %v551_v34, %v573_v8  ;;  %1587 = vpow2.f32 %v595_v13 }
 0x36c   :  { %v1888_v61 = vpop.eup %1583  ;;  %v597_v14 = vmul.f32 1.442695, %v583_v12 }
 0x36d   :  { %v576_v62 = vpop.xlane.xlu0 %575  ;;  %v610_v63 = vsel %vm155_vm2, %v1888_v61, 0.0  ;;  %v747_v18 = vpop.permute.xlu1 %746 }
 0x36e   :  { %611 = vadd.xlane.f32.xlu0 %v610_v63  ;;  %v584_v16 = vsub.f32 %v552_v40, %v576_v62  ;;  %1589 = vpow2.f32 %v597_v14  ;;  %v752_v36 = vsel %vm654_vm3, %v747_v18, 0 }
 0x370   :  { %v599_v17 = vmul.f32 1.442695, %v584_v16 }
 0x371   :  { %v699_v0 = vpop.permute.xlu0 %698  ;;  %v795_v19 = vpop.permute.xlu1 %794 }
 0x372   :  { %v704_v2 = vsel %vm654_vm3, %v699_v0, 0  ;;  %1591 = vpow2.f32 %v599_v17  ;;  %v800_v44 = vsel %vm654_vm3, %v795_v19, 0 }
 0x373   :  { %1468 = vmatpush3.bf16.msra.mxu0 %v704_v2 }
 0x374   :  { %1479 = vmatprep.subr.bf16.mxu0 %v1679_v1 }
 0x37b   :  { %890 = vrot.lane.b32.xlu1 %v1794_v26, %s1676_s6  ;;  %v1900_v26 = vpop.eup %1585 }
 0x37c   :  { %v613_v15 = vsel %vm155_vm2, %v1900_v26, 0.0 }
 0x384   :  { %842 = vrot.lane.b32.xlu0 %v1796_v27, %s1676_s6  ;;  %v1902_v27 = vpop.eup %1587 }
 0x385   :  { %v1906_v21 = vpop.eup %1589  ;;  %v616_v28 = vsel %vm155_vm2, %v1902_v27, 0.0 }
 0x386   :  { %v619_v25 = vsel %vm155_vm2, %v1906_v21, 0.0  ;;  %v1912_v29 = vpop.eup %1591 }
 0x387   :  { %v622_v32 = vsel %vm155_vm2, %v1912_v29, 0.0 }
 0x39f   :  { %614 = vadd.xlane.f32.xlu1 %v613_v15 }
 0x3a2   :  { %v603_v22 = vpop.xlane.xlu1 %602 }
 0x3a3   :  { %1593 = vrcp.f32 %v603_v22  ;;  %620 = vadd.xlane.f32.xlu1 %v619_v25  ;;  %617 = vadd.xlane.f32.xlu0 %v616_v28 }
 0x3a7   :  { %623 = vadd.xlane.f32.xlu0 %v622_v32  ;;  %v1569_v32 = vld [vmem:[%s2020_s2] sm:$0xff]  }
 0x3ad   :  { %v1594_v33 = vpop.eup %1593 }
 0x3ae   :  { %v633_v34 = vmul.f32 %v1594_v33, %v1876_v48 }
 0x3b0   :  { %v641_v35 = vpack.c.bf16 %v633_v34, %v633_v34 }
 0x3b2   :  { %1464 = vmatmul.mubr.msk.bf16.vlgmr.msra.gmra.mrb[16].mxu1 %vm155_vm2, %v641_v35 }
 0x3b3   :  { %1474 = vmatpush3.bf16.msra.mxu1 %v752_v36  ;;  %1475 = vmatprep.mubr.msk.bf16.mxu1 %vm1680_vm0, %v1679_v1  ;;  %v1570_v36 = vld [vmem:[%s2020_s2 + $0x8] sm:$0xff]   ;;  %s1687_s2 = smov 24  }
 0x3b4   :  { %986 = vrot.lane.b32.xlu1 %v1802_v31, %s1676_s6  ;;  %1485 = vmatprep.subr.bf16.mxu1 %v1679_v1 }
 0x3bd   :  { %938 = vrot.lane.b32.xlu0 %v1800_v30, %s1676_s6 }
 0x3f3   :  { %v606_v37 = vpop.xlane.xlu0 %605 }
 0x3f4   :  { %1595 = vrcp.f32 %v606_v37 }
 0x3f7   :  { %v609_v38 = vpop.xlane.xlu1 %608 }
 0x3f8   :  { %1597 = vrcp.f32 %v609_v38 }
 0x3fb   :  { %v612_v39 = vpop.xlane.xlu0 %611  ;;  %v891_v49 = vpop.permute.xlu1 %890 }
 0x3fc   :  { %1599 = vrcp.f32 %v612_v39  ;;  %v896_v52 = vsel %vm654_vm3, %v891_v49, 0 }
 0x3fe   :  { %v1596_v40 = vpop.eup %1595 }
 0x3ff   :  { %v634_v41 = vmul.f32 %v1596_v40, %v1880_v50  ;;  %v843_v45 = vpop.permute.xlu0 %842 }
 0x400   :  { %v848_v48 = vsel %vm654_vm3, %v843_v45, 0 }
 0x401   :  { %v642_v42 = vpack.c.bf16 %v634_v41, %v634_v41 }
 0x402   :  { %v1598_v43 = vpop.eup %1597 }
 0x403   :  { %v635_v31 = vmul.f32 %v1598_v43, %v1884_v59  ;;  %1470 = vmatmul.mubr.msk.bf16.vlgmr.msra.gmra.mrb[20].mxu0 %vm155_vm2, %v642_v42 }
 0x404   :  { %1480 = vmatpush3.bf16.msra.mxu0 %v800_v44  ;;  %1481 = vmatprep.mubr.msk.bf16.mxu0 %vm1680_vm0, %v1679_v1 }
 0x405   :  { %v643_v30 = vpack.c.bf16 %v635_v31, %v635_v31  ;;  %1491 = vmatprep.subr.bf16.mxu0 %v1679_v1 }
 0x406   :  { %v1600_v46 = vpop.eup %1599 }
 0x407   :  { %v636_v47 = vmul.f32 %v1600_v46, %v1888_v61  ;;  %1476 = vmatmul.mubr.msk.bf16.vlgmr.msra.gmra.mrb[20].mxu1 %vm155_vm2, %v643_v30 }
 0x408   :  { %1486 = vmatpush3.bf16.msra.mxu1 %v848_v48  ;;  %1487 = vmatprep.mubr.msk.bf16.mxu1 %vm1680_vm0, %v1679_v1 }
 0x409   :  { %v644_v51 = vpack.c.bf16 %v636_v47, %v636_v47  ;;  %1497 = vmatprep.subr.bf16.mxu1 %v1679_v1 }
 0x40b   :  { %1482 = vmatmul.mubr.msk.bf16.vlgmr.msra.gmra.mrb[24].mxu0 %vm155_vm2, %v644_v51 }
 0x40c   :  { %1492 = vmatpush3.bf16.msra.mxu0 %v896_v52  ;;  %1493 = vmatprep.mubr.msk.bf16.mxu0 %vm1680_vm0, %v1679_v1 }
 0x40d   :  { %1503 = vmatprep.subr.bf16.mxu0 %v1679_v1 }
 0x42c   :  { %v615_v53 = vpop.xlane.xlu1 %614 }
 0x42d   :  { %1601 = vrcp.f32 %v615_v53 }
 0x430   :  { %v621_v24 = vpop.xlane.xlu1 %620  ;;  %v618_v54 = vpop.xlane.xlu0 %617 }
 0x431   :  { %1603 = vrcp.f32 %v621_v24 }
 0x432   :  { %1605 = vrcp.f32 %v618_v54 }
 0x434   :  { %v624_v23 = vpop.xlane.xlu0 %623  ;;  %v987_v62 = vpop.permute.xlu1 %986 }
 0x435   :  { %1607 = vrcp.f32 %v624_v23  ;;  %v992_v2 = vsel %vm654_vm3, %v987_v62, 0 }
 0x437   :  { %v1602_v55 = vpop.eup %1601 }
 0x438   :  { %v637_v20 = vmul.f32 %v1602_v55, %v1900_v26  ;;  %v939_v57 = vpop.permute.xlu0 %938 }
 0x439   :  { %v944_v60 = vsel %vm654_vm3, %v939_v57, 0 }
 0x43a   :  { %v645_v50 = vpack.c.bf16 %v637_v20, %v637_v20 }
 0x43b   :  { %v1604_v58 = vpop.eup %1603 }
 0x43c   :  { %v1606_v59 = vpop.eup %1605  ;;  %1488 = vmatmul.mubr.msk.bf16.vlgmr.msra.gmra.mrb[24].mxu1 %vm155_vm2, %v645_v50  ;;  %v639_v61 = vmul.f32 %v1604_v58, %v1906_v21 }
 0x43d   :  { %v638_v56 = vmul.f32 %v1606_v59, %v1902_v27  ;;  %1498 = vmatpush3.bf16.msra.mxu1 %v944_v60  ;;  %1499 = vmatprep.mubr.msk.bf16.mxu1 %vm1680_vm0, %v1679_v1 }
 0x43e   :  { %1509 = vmatprep.subr.bf16.mxu1 %v1679_v1  ;;  %v647_v5 = vpack.c.bf16 %v639_v61, %v639_v61 }
 0x43f   :  { %v646_v63 = vpack.c.bf16 %v638_v56, %v638_v56  ;;  %v1608_v0 = vpop.eup %1607 }
 0x440   :  { %v640_v6 = vmul.f32 %v1608_v0, %v1912_v29  ;;  %v1572_v0 = vld [vmem:[#allocation2 + $0x8] sm:$0xff]  }
 0x441   :  { %1494 = vmatmul.mubr.msk.bf16.vlgmr.msra.gmra.mrb[28].mxu0 %vm155_vm2, %v646_v63  ;;  %v1571_v63 = vld [vmem:[#allocation2] sm:$0xff]  }
 0x442   :  { %1504 = vmatpush3.bf16.msra.mxu0 %v992_v2  ;;  %1505 = vmatprep.mubr.msk.bf16.mxu0 %vm1680_vm0, %v1679_v1  ;;  %v648_v8 = vpack.c.bf16 %v640_v6, %v640_v6  ;;  %v1073_v2 = vsub.s32 1, %v1776_v7 }
 0x443   :  { %1517 = vmatprep.subr.bf16.mxu0 %v1679_v1 }
 0x444   :  { %1500 = vmatmul.mubr.msk.bf16.vlgmr.msra.gmra.mrb[28].mxu1 %vm155_vm2, %v647_v5  ;;  %v1074_v5 = vrot.slane %v1782_v9, %v1073_v2 }
 0x445   :  { %1513 = vmatprep.mubr.msk.bf16.mxu1 %vm1680_vm0, %v1679_v1  ;;  %1510 = vmatpush3.bf16.msra.mxu1 %v1569_v32 }
 0x446   :  { %1511 = vmatprep.subr.bf16.mxu1 %v1679_v1 }
 0x449   :  { %1506 = vmatmul.mubr.msk.bf16.vlgmr.msra.gmra.mrb[32].mxu0 %vm155_vm2, %v648_v8  ;;  %1512 = vmatpush3.bf16.msra.mxu1 %v1570_v36  ;;  %v1132_v8 = vstv %s1131_s12 }
 0x44a   :  { %1521 = vmatprep.mubr.msk.bf16.mxu0 %vm1680_vm0, %v1679_v1  ;;  %1525 = vmatprep.subr.bf16.mxu1 %v1679_v1 }
 0x44b   :  { %1518 = vmatpush3.bf16.msra.mxu0 %v1571_v63 }
 0x44c   :  { %1519 = vmatprep.subr.bf16.mxu0 %v1679_v1 }
 0x44f   :  { %1520 = vmatpush3.bf16.msra.mxu0 %v1572_v0 }
 0x485   :  { %v692_v10 = vpop.f32.mrb[16].mxu1 }
 0x486   :  { %v1465_v11 = vpop.f32.mrb[17].mxu1 }
 0x487   :  { %v695_v12 = vpop.f32.mrb[18].mxu1 }
 0x488   :  { %v1466_v13 = vpop.f32.mrb[19].mxu1 }
 0x4d6   :  { %v740_v14 = vpop.f32.mrb[20].mxu0 }
 0x4d7   :  { %v1471_v16 = vpop.f32.mrb[21].mxu0 }
 0x4d8   :  { %v743_v17 = vpop.f32.mrb[22].mxu0 }
 0x4d9   :  { %v1472_v18 = vpop.f32.mrb[23].mxu0 }
 0x4da   :  { %v788_v26 = vpop.f32.mrb[20].mxu1 }
 0x4db   :  { %v1477_v27 = vpop.f32.mrb[21].mxu1 }
 0x4dc   :  { %v791_v19 = vpop.f32.mrb[22].mxu1 }
 0x4dd   :  { %v1478_v15 = vpop.f32.mrb[23].mxu1  ;;  %v1573_v19 = vld [vmem:[%s2022_s4] sm:$0xff]  }
 0x4de   :  { %v836_v21 = vpop.f32.mrb[24].mxu0  ;;  %v1574_v15 = vld [vmem:[%s2022_s4 + $0x8] sm:$0xff]  }
 0x4df   :  { %v1483_v22 = vpop.f32.mrb[25].mxu0 }
 0x4e0   :  { %v839_v25 = vpop.f32.mrb[26].mxu0 }
 0x4e1   :  { %v1484_v28 = vpop.f32.mrb[27].mxu0 }
 0x50f   :  { %v884_v29 = vpop.f32.mrb[24].mxu1 }
 0x510   :  { %v1489_v33 = vpop.f32.mrb[25].mxu1 }
 0x511   :  { %v887_v34 = vpop.f32.mrb[26].mxu1 }
 0x512   :  { %v1490_v35 = vpop.f32.mrb[27].mxu1 }
 0x514   :  { %v932_v37 = vpop.f32.mrb[28].mxu0 }
 0x515   :  { %v1552_v38 = vpack.i.bf16 %v932_v37, %v740_v14  ;;  %v1495_v39 = vpop.f32.mrb[29].mxu0 }
 0x516   :  { %v935_v40 = vpop.f32.mrb[30].mxu0 }
 0x517   :  { %1553 = vrot.lane.b32.xlu0 %v1552_v38, %s1685_s10  ;;  %v1496_v41 = vpop.f32.mrb[31].mxu0  ;;  %v980_v42 = vpop.f32.mrb[28].mxu1 }
 0x518   :  { %v1557_v43 = vpack.i.bf16 %v980_v42, %v788_v26  ;;  %v1501_v44 = vpop.f32.mrb[29].mxu1 }
 0x519   :  { %v983_v31 = vpop.f32.mrb[30].mxu1 }
 0x51a   :  { %1558 = vrot.lane.b32.xlu1 %v1557_v43, %s1686_s11  ;;  %v1502_v45 = vpop.f32.mrb[31].mxu1 }
 0x51c   :  { %v1028_v30 = vpop.f32.mrb[32].mxu0 }
 0x51d   :  { %v1562_v46 = vpack.i.bf16 %v1028_v30, %v836_v21  ;;  %v1507_v47 = vpop.f32.mrb[33].mxu0  ;;  %v1144_v21 = vsub.s32 2, %v1776_v7 }
 0x51e   :  { %v1031_v48 = vpop.f32.mrb[34].mxu0 }
 0x51f   :  { %1563 = vrot.lane.b32.xlu0 %v1562_v46, %s1687_s2  ;;  %v1508_v49 = vpop.f32.mrb[35].mxu0  ;;  %v1145_v22 = vrot.slane %v1782_v9, %v1144_v21 }
 0x589   :  { %v1554_v51 = vpop.permute.xlu0 %1553 }
 0x58a   :  { %v1556_v53 = vunpack.i.h.bf16 %v1554_v51  ;;  %v1555_v24 = vunpack.i.l.bf16 %v1554_v51 }
 0x58c   :  { %v1559_v52 = vpop.permute.xlu1 %1558  ;;  %v1059_v20 = vsel %vm155_vm2, %v884_v29, %v1556_v53  ;;  %v1058_v57 = vsel %vm155_vm2, %v692_v10, %v1555_v24 }
 0x58d   :  { %v1561_v54 = vunpack.i.h.bf16 %v1559_v52  ;;  %v1560_v23 = vunpack.i.l.bf16 %v1559_v52  ;;  %v1231_v52 = vsub.s32 3, %v1776_v7 }
 0x58f   :  { %v1061_v59 = vsel %vm1060_vm4, %v1058_v57, %v1560_v23  ;;  %v1062_v60 = vsel %vm1060_vm4, %v1059_v20, %v1561_v54  ;;  %v1232_v53 = vrot.slane %v1782_v9, %v1231_v52 }
 0x591   :  { %v1564_v55 = vpop.permute.xlu0 %1563 }
 0x592   :  { %v1566_v50 = vunpack.i.h.bf16 %v1564_v55  ;;  %v1565_v58 = vunpack.i.l.bf16 %v1564_v55 }
 0x594   :  { %v1065_v56 = vsel %vm1063_vm5, %v1062_v60, %v1566_v50  ;;  %v1064_v61 = vsel %vm1063_vm5, %v1061_v59, %v1565_v58 }
 0x595   :  { %v1066_v62 = vpack.c.bf16 %v1065_v56, %v1064_v61 }
 0x597   :  { %1514 = vmatmul.mubr.msk.bf16.vlgmr.msra.gmra.mrb[32].mxu1 %vm79_vm1, %v1066_v62 }
 0x598   :  { %1533 = vmatprep.mubr.msk.bf16.mxu1 %vm1680_vm0, %v1679_v1  ;;  %1526 = vmatpush3.bf16.msra.mxu1 %v1573_v19 }
 0x599   :  { %1527 = vmatprep.subr.bf16.mxu1 %v1679_v1 }
 0x59c   :  { %1528 = vmatpush3.bf16.msra.mxu1 %v1574_v15 }
 0x59d   :  { %1529 = vmatprep.subr.bf16.mxu1 %v1679_v1 }
 0x66a   :  { %v1124_v6 = vpop.f32.mrb[32].mxu1 }
 0x66b   :  { %v1125_v10 = vadd.f32 %v1124_v6, %v1074_v5  ;;  %v1515_v11 = vpop.f32.mrb[33].mxu1 }
 0x66c   :  { %v1127_v12 = vpop.f32.mrb[34].mxu1 }
 0x66d   :  { %v1133_v13 = vmul.f32 %v1132_v8, %v1125_v10  ;;  %v1128_v14 = vadd.f32 %v1127_v12, %v1074_v5  ;;  %v1516_v16 = vpop.f32.mrb[35].mxu1 }
 0x66f   :  { %v1134_v17 = vmul.f32 %v1132_v8, %v1128_v14  ;;  %v1135_v18 = vadd.f32 %v1133_v13, %v1760_v3  ;;  %v1575_v3 = vld [vmem:[%s2022_s4 + $0x10] sm:$0xff]  }
 0x670   :  { %1530 = vmatpush3.bf16.msra.mxu1 %v1575_v3 }
 0x671   :  { %v1136_v26 = vadd.f32 %v1134_v17, %v1765_v4  ;;  %v1576_v4 = vld [vmem:[%s2022_s4 + $0x18] sm:$0xff]   ;;  %1531 = vmatprep.subr.bf16.mxu1 %v1679_v1  ;;  %s1358_s4 = sld [smem:[#allocation6 + $0x1]] }
 0x673   :  { %v1137_v27 = vpack.c.bf16 %v1136_v26, %v1135_v18 }
 0x674   :  { %1532 = vmatpush3.bf16.msra.mxu1 %v1576_v4 }
 0x675   :  { %1522 = vmatmul.mubr.msk.bf16.vlgmr.msra.gmra.mrb[36].mxu0 %vm79_vm1, %v1137_v27 }
 0x677   :  { %v1303_v54 = vstv %s1358_s4 }
 0x748   :  { %v1195_v25 = vpop.f32.mrb[36].mxu0 }
 0x749   :  { %v1196_v28 = vadd.f32 %v1195_v25, %v1145_v22  ;;  %v1523_v29 = vpop.f32.mrb[37].mxu0 }
 0x74a   :  { %v1198_v32 = vpop.f32.mrb[38].mxu0 }
 0x74b   :  { %v1204_v33 = vmul.f32 0.044715, %v1196_v28  ;;  %v1199_v34 = vadd.f32 %v1198_v32, %v1145_v22  ;;  %v1524_v35 = vpop.f32.mrb[39].mxu0  ;;  %v1202_v30 = vmul.f32 0.5, %v1196_v28 }
 0x74d   :  { %v1206_v36 = vmul.f32 %v1204_v33, %v1196_v28  ;;  %v1205_v37 = vmul.f32 0.044715, %v1199_v34  ;;  %v1203_v46 = vmul.f32 0.5, %v1199_v34 }
 0x74f   :  { %v1208_v38 = vmul.f32 %v1206_v36, %v1196_v28  ;;  %v1207_v39 = vmul.f32 %v1205_v37, %v1199_v34 }
 0x751   :  { %v1210_v40 = vadd.f32 %v1208_v38, %v1196_v28  ;;  %v1209_v41 = vmul.f32 %v1207_v39, %v1199_v34 }
 0x753   :  { %v1212_v42 = vmul.f32 0.7978846, %v1210_v40  ;;  %v1211_v1 = vadd.f32 %v1209_v41, %v1199_v34 }
 0x755   :  { %1609 = vtanh.f32 %v1212_v42  ;;  %v1213_v43 = vmul.f32 0.7978846, %v1211_v1 }
 0x757   :  { %1611 = vtanh.f32 %v1213_v43 }
 0x75f   :  { %v1610_v44 = vpop.eup %1609 }
 0x760   :  { %v1216_v31 = vadd.f32 1.0, %v1610_v44 }
 0x761   :  { %v1612_v45 = vpop.eup %1611 }
 0x762   :  { %v1217_v47 = vadd.f32 1.0, %v1612_v45  ;;  %v1218_v48 = vmul.f32 %v1216_v31, %v1202_v30 }
 0x764   :  { %v1219_v49 = vmul.f32 %v1217_v47, %v1203_v46 }
 0x766   :  { %v1220_v51 = vpack.c.bf16 %v1219_v49, %v1218_v48 }
 0x768   :  { %1534 = vmatmul.mubr.msk.bf16.vlgmr.msra.gmra.mrb[36].mxu1 %vm1257_vm6, %v1220_v51 }
 0x83b   :  { %v1295_v24 = vpop.f32.mrb[36].mxu1 }
 0x83c   :  { %v1296_v23 = vadd.f32 %v1295_v24, %v1232_v53  ;;  %v1535_v55 = vpop.f32.mrb[37].mxu1 }
 0x83d   :  { %v1298_v20 = vpop.f32.mrb[38].mxu1 }
 0x83e   :  { %v1304_v57 = vmul.f32 %v1303_v54, %v1296_v23  ;;  %v1299_v50 = vadd.f32 %v1298_v20, %v1232_v53  ;;  %v1536_v58 = vpop.f32.mrb[39].mxu1 }
 0x840   :  { %v1306_v59 = vadd.f32 %v1304_v57, %v1135_v18  ;;  %v1305_v60 = vmul.f32 %v1303_v54, %v1299_v50 }
 0x842   :  { %1308 = vst.msk [vmem:[#allocation7] sm:$0xff] %vm79_vm1, %v1306_v59  ;;  %v1307_v56 = vadd.f32 %v1305_v60, %v1136_v26 }
 0x844   :  { %1309 = vst.msk [vmem:[#allocation7 + $0x8] sm:$0xff] %vm79_vm1, %v1307_v56 }
 0x845   :  { %1658 = shalt.err (!%p1655_p3)
}
 0x846   :  { %s1659_s24 = scalar_lea.hbm %s2025_s7, 256 }
 0x847   :  { %p1660_p4 = scmp.ne.s32.totalorder %s2025_s7, %s1659_s24  ;;  %p1663_p5 = scmp.lt.u32.totalorder %s1659_s24, %s2025_s7 }
 0x849   :  { %p1665_p6 = pnand %p1663_p5, %p1660_p4 }
 0x84b   :  { %1668 = shalt.err (!%p1665_p6)
}
 0x84c   :  { %s1689_s27 = smov 128  }
 0x84d   :  { %1321 = dma.vmem_to_hbm [thread:$0]  %s1316_s3, 256, %s2025_s7, [#allocation4], %s1689_s27, %s1689_s27, %s1685_s10  }
 0x84e   :  { %1673 = dma.done.wait [#allocation4], 256  }
 0x84f   :  { %1674 = vsyncadd [#allocation4], 4294967040 }
 0x850   :  { %1325 = vsyncpa [#allocation3], 1 }
 0x851   :  { %1326 = vsyncpa [#allocation4], 1 }
 0x852   :  { %1327 = vsyncpa [#allocation5], 1 }

</bundles_post_ra>
